<compile_context>
chip_gen: v6e
topology: v6e:2x2x1
jax: 0.10.0
libtpu: 0.0.40
codegen_flags: <defaults>
</compile_context>

<pallas_src>
import functools

import jax
import jax.numpy as jnp
from jax.experimental import pallas as pl
from jax.experimental.pallas import tpu as pltpu

_LANES = 128


# ---------------------------------------------------------------------------
# Kernel 1: global average pool (the only part that touches the big tensor).
# ---------------------------------------------------------------------------
def _pool_kernel(x_ref, feats_ref, acc_ref, *, inv_hw: float):
    # x_ref:     (bblk, C, THW)  native-dtype spatial tile
    # feats_ref: (bblk, C)       f32 pooled features (output, resident over k)
    # acc_ref:   (bblk, C, 128)  f32 scratch accumulator
    k = pl.program_id(1)

    @pl.when(k == 0)
    def _():
        acc_ref[...] = jnp.zeros_like(acc_ref)

    thw = x_ref.shape[-1]           # static, multiple of 128
    acc = acc_ref[...]
    # VPU chunked accumulation: pure elementwise adds over 128-lane columns;
    # no per-step XLU cross-lane reduction.
    for i in range(thw // _LANES):
        chunk = x_ref[:, :, pl.ds(i * _LANES, _LANES)]
        acc = acc + chunk.astype(jnp.float32)
    acc_ref[...] = acc

    @pl.when(k == pl.num_programs(1) - 1)
    def _():
        # Single small XLU lane-reduce + divide by the TRUE H*W.
        feats_ref[...] = (jnp.sum(acc, axis=-1) * inv_hw).astype(feats_ref.dtype)


# ---------------------------------------------------------------------------
# Kernel 2: projection-discriminator head (tiny).
# ---------------------------------------------------------------------------
def _head_kernel(bias_ref, feats_ref, yemb_ref, w_ref, o_ref):
    # bias_ref:  (1,)   SMEM scalar
    # feats_ref: (B, C) pooled features (f32)
    # yemb_ref:  (B, C) gathered class embeddings
    # w_ref:     (1, C) Linear(C, 1) weight
    # o_ref:     (B, B) output
    feats = feats_ref[...].astype(jnp.float32)
    yemb = yemb_ref[...].astype(jnp.float32)
    w = w_ref[...].astype(jnp.float32)
    nt = (((1,), (1,)), ((), ()))   # contract last dims of both (A @ B.T), no transposes
    lin = jax.lax.dot_general(feats, w, nt, preferred_element_type=jnp.float32)      # (B, 1)
    proj = jax.lax.dot_general(yemb, feats, nt, preferred_element_type=jnp.float32)  # (B, B)
    o_ref[...] = (proj + (lin + bias_ref[0])).astype(o_ref.dtype)


# ---------------------------------------------------------------------------
# Wrapper
# ---------------------------------------------------------------------------
def _choose_spatial_tile(hw, rows, itemsize, max_tile_bytes=8 << 20, max_lanes=2048):
    """Multiple-of-128 spatial tile. Sized so the double-buffered input tile
    stays well under a 32 MiB scoped-VMEM budget (v7x-safe) while keeping each
    grid step's DMA large (per-step overhead ~0.35 us, so bigger tiles track
    the HBM roofline better)."""
    by_bytes = max(1, max_tile_bytes // max(1, rows * itemsize))
    hw_128 = -(-hw // _LANES) * _LANES
    t = min(max_lanes, by_bytes, hw_128)
    return max(_LANES, (t // _LANES) * _LANES)


def projection_discr(x, y, emb_weight, lin_weight, lin_bias):
    """x: (B, C, H, W) NCHW feature map (any float dtype); y: (B,) int labels."""
    B, C, H, W = x.shape
    hw = H * W
    x_flat = x.reshape(B, C, hw)            # layout flatten only; keep native dtype

    # Batch blocking: shard the pooling read across TensorCores when B allows.
    bblk = 8 if (B % 8 == 0) else B
    nb = B // bblk

    thw = _choose_spatial_tile(hw, bblk * C, jnp.dtype(x.dtype).itemsize)
    hw_p = -(-hw // thw) * thw
    if hw_p != hw:
        # Zero padding does not bias the mean: we divide by the true H*W.
        x_flat = jnp.pad(x_flat, ((0, 0), (0, 0), (0, hw_p - hw)))
    nk = hw_p // thw

    feats = pl.pallas_call(
        functools.partial(_pool_kernel, inv_hw=1.0 / float(hw)),
        out_shape=jax.ShapeDtypeStruct((B, C), jnp.float32),
        grid_spec=pltpu.PrefetchScalarGridSpec(
            num_scalar_prefetch=0,
            grid=(nb, nk),
            in_specs=[pl.BlockSpec((bblk, C, thw), lambda b, k: (b, 0, k))],
            out_specs=pl.BlockSpec((bblk, C), lambda b, k: (b, 0)),
            scratch_shapes=[pltpu.VMEM((bblk, C, _LANES), jnp.float32)],
        ),
        compiler_params=pltpu.CompilerParams(
            dimension_semantics=("parallel", "arbitrary"),
            vmem_limit_bytes=32 * 1024 * 1024,
        ),
    )(x_flat)

    # TODO(synk): nn.Embedding row gather kept as wrapper glue (trivial (B, C)
    # gather); could be folded into the head kernel with scalar-prefetch
    # Element indexing if it ever mattered.
    y_emb = emb_weight[y]
    bias = lin_bias.reshape(1)

    out = pl.pallas_call(
        _head_kernel,
        out_shape=jax.ShapeDtypeStruct((B, B), jnp.float32),
        in_specs=[
            pl.BlockSpec(memory_space=pltpu.MemorySpace.SMEM),   # bias scalar
            pl.BlockSpec((B, C), lambda: (0, 0)),                # feats
            pl.BlockSpec((B, C), lambda: (0, 0)),                # y_emb
            pl.BlockSpec((1, C), lambda: (0, 0)),                # linear weight
        ],
        out_specs=pl.BlockSpec((B, B), lambda: (0, 0)),
    )(bias, feats, y_emb, lin_weight)
    return out


def _reference(x, y, emb_weight, lin_weight, lin_bias):
    B, C, H, W = x.shape
    feats = jnp.mean(x.reshape(B, C, H * W).astype(jnp.float32), axis=-1)
    y_emb = emb_weight[y].astype(jnp.float32)
    lin = feats @ lin_weight.astype(jnp.float32).T + lin_bias.astype(jnp.float32)[None, :]
    return lin + y_emb @ feats.T


if __name__ == "__main__":
    num_classes = 5
    key = jax.random.PRNGKey(0)
    kx, ky, ke, kw, kb, kx2, ky2 = jax.random.split(key, 7)

    # Parameters (shapes from nn.Embedding / nn.Linear).
    B, C, H, W = 2, 4, 16, 16
    emb_weight = jax.random.normal(ke, (num_classes, C), dtype=jnp.float32)
    lin_weight = jax.random.normal(kw, (1, C), dtype=jnp.float32) * (1.0 / C ** 0.5)
    lin_bias = jax.random.normal(kb, (1,), dtype=jnp.float32) * 0.1

    # Primary check: f32 NCHW input at the nominal small shape.
    x = jax.random.normal(kx, (B, C, H, W), dtype=jnp.float32)
    y = jax.random.randint(ky, (B,), 0, num_classes)
    out = jax.block_until_ready(projection_discr(x, y, emb_weight, lin_weight, lin_bias))
    ref = _reference(x, y, emb_weight, lin_weight, lin_bias)
    assert out.shape == (B, B)
    assert jnp.allclose(out, ref, atol=1e-5, rtol=1e-5), float(jnp.max(jnp.abs(out - ref)))

    # Secondary check: bf16 activations + larger spatial extent so the pooling
    # kernel actually runs multiple accumulation steps across the HW grid axis.
    B2, C2, H2, W2 = 2, 4, 32, 32
    x2 = jax.random.normal(kx2, (B2, C2, H2, W2), dtype=jnp.float32).astype(jnp.bfloat16)
    y2 = jax.random.randint(ky2, (B2,), 0, num_classes)
    out2 = jax.block_until_ready(projection_discr(x2, y2, emb_weight, lin_weight, lin_bias))
    ref2 = _reference(x2, y2, emb_weight, lin_weight, lin_bias)
    assert out2.shape == (B2, B2)
    assert jnp.allclose(out2, ref2, atol=1e-4, rtol=1e-4), float(jnp.max(jnp.abs(out2 - ref2)))

    print("KERNEL_OK")
</pallas_src>

<mosaic_0001>
module attributes {stable_mosaic.version = 11 : i64} {
  func.func @_pool_kernel(%arg0: i32, %arg1: i32, %arg2: memref<2x4x256xf32, #tpu.memory_space<vmem>>, %arg3: memref<2x4xf32, #tpu.memory_space<vmem>>, %arg4: memref<2x4x128xf32, #tpu.memory_space<vmem>>) attributes {dimension_semantics = [#tpu.dimension_semantics<parallel>, #tpu.dimension_semantics<arbitrary>], iteration_bounds = array<i64: 1, 1>, scalar_prefetch = 0 : i64, scratch_operands = 1 : i64, tpu.core_type = #tpu.core_type<tc>, window_params = [{transform_indices = @transform_0, window_bounds = array<i64: 2, 4, 256>}, {transform_indices = @transform_1, window_bounds = array<i64: 2, 4>}]} {
    %c0_i32 = arith.constant 0 : i32
    %0 = arith.cmpi eq, %arg1, %c0_i32 : i32
    %1 = arith.extui %0 : i1 to i32
    %c0_i32_0 = arith.constant 0 : i32
    %2 = arith.cmpi ne, %1, %c0_i32_0 : i32
    scf.if %2 {
      %cst = arith.constant 0.000000e+00 : f32
      %12 = vector.broadcast %cst : f32 to vector<2x4x128xf32>
      %c0_13 = arith.constant 0 : index
      %c0_14 = arith.constant 0 : index
      %c0_15 = arith.constant 0 : index
      %13 = vector.load %arg4[%c0_13, %c0_14, %c0_15] : memref<2x4x128xf32, #tpu.memory_space<vmem>>, vector<2x4x128xf32>
      tpu.vector_store %arg4[%c0_13, %c0_14, %c0_15], %12 {strides = array<i32>} : memref<2x4x128xf32, #tpu.memory_space<vmem>>, vector<2x4x128xf32>,
    } else {
    }
    %c0 = arith.constant 0 : index
    %c0_1 = arith.constant 0 : index
    %c0_2 = arith.constant 0 : index
    %3 = vector.load %arg4[%c0, %c0_1, %c0_2] : memref<2x4x128xf32, #tpu.memory_space<vmem>>, vector<2x4x128xf32>
    %c0_3 = arith.constant 0 : index
    %c0_4 = arith.constant 0 : index
    %c0_5 = arith.constant 0 : index
    %4 = vector.load %arg2[%c0_3, %c0_4, %c0_5] : memref<2x4x256xf32, #tpu.memory_space<vmem>>, vector<2x4x128xf32>
    %5 = arith.addf %3, %4 : vector<2x4x128xf32>
    %c0_6 = arith.constant 0 : index
    %c0_7 = arith.constant 0 : index
    %c128 = arith.constant 128 : index
    %6 = vector.load %arg2[%c0_6, %c0_7, %c128] : memref<2x4x256xf32, #tpu.memory_space<vmem>>, vector<2x4x128xf32>
    %7 = arith.addf %5, %6 : vector<2x4x128xf32>
    %c0_8 = arith.constant 0 : index
    %c0_9 = arith.constant 0 : index
    %c0_10 = arith.constant 0 : index
    %8 = vector.load %arg4[%c0_8, %c0_9, %c0_10] : memref<2x4x128xf32, #tpu.memory_space<vmem>>, vector<2x4x128xf32>
    tpu.vector_store %arg4[%c0_8, %c0_9, %c0_10], %7 {strides = array<i32>} : memref<2x4x128xf32, #tpu.memory_space<vmem>>, vector<2x4x128xf32>,
    %c0_i32_11 = arith.constant 0 : i32
    %9 = arith.cmpi eq, %arg1, %c0_i32_11 : i32
    %10 = arith.extui %9 : i1 to i32
    %c0_i32_12 = arith.constant 0 : i32
    %11 = arith.cmpi ne, %10, %c0_i32_12 : i32
    scf.if %11 {
      %cst = arith.constant dense<0.000000e+00> : vector<2x4xf32>
      %12 = vector.multi_reduction <add>, %7, %cst [2] : vector<2x4x128xf32> to vector<2x4xf32>
      %cst_13 = arith.constant 3.906250e-03 : f32
      %13 = vector.broadcast %cst_13 : f32 to vector<2x4xf32>
      %14 = arith.mulf %12, %13 : vector<2x4xf32>
      %c0_14 = arith.constant 0 : index
      %c0_15 = arith.constant 0 : index
      %15 = vector.load %arg3[%c0_14, %c0_15] : memref<2x4xf32, #tpu.memory_space<vmem>>, vector<2x4xf32>
      tpu.vector_store %arg3[%c0_14, %c0_15], %14 {strides = array<i32>} : memref<2x4xf32, #tpu.memory_space<vmem>>, vector<2x4xf32>,
    } else {
    }
    return
  }
  func.func @transform_0(%arg0: i32, %arg1: i32) -> (i32, i32, i32) {
    %c0_i32 = arith.constant 0 : i32
    %c0_i32_0 = arith.constant 0 : i32
    return %arg0, %c0_i32, %arg1 : i32, i32, i32
  }
  func.func @transform_1(%arg0: i32, %arg1: i32) -> (i32, i32) {
    %c0_i32 = arith.constant 0 : i32
    %c0_i32_0 = arith.constant 0 : i32
    return %arg0, %c0_i32 : i32, i32
  }
}

</mosaic_0001>

<bundles_post_ra>
// kernel: tpu_custom_call.1
= control target key start
LH: loop header
LB: loop body
LE: loop exit
PB: predicated region body
PF: predicated region fallthrough
CT: control target
= control target key end

     0   :  { %6 = vsyncpa [#allocation4], 0  ;;  %s155_s0 = inlined_call_operand.hbm [shape: f32[2,4,256], index: 0, kind: input, shape index: {}]   ;;  %s156_s1 = inlined_call_operand.hbm [shape: f32[2,4], index: 1, kind: output, shape index: {}]  }
   0x1   :  { %7 = vsyncpa [#allocation5], 0  ;;  %s134_s6 = smov [#allocation3]  }
   0x2   :  { %s13_s7 = sshll.u32 %s134_s6, 4  ;;  %s14_s7 = int_to_ptr.vmem [resolvable:$true] %s13_s7 }
   0x3   :  { %s98_s8 = scalar_lea.vmem %s14_s7, 256  ;;  %p103_p1 = scmp.lt.s32.totalorder %s14_s7, %s14_s7 }
   0x4   :  { %p99_p0 = scmp.ne.s32.totalorder %s14_s7, %s98_s8  ;;  %p104_p2 = scmp.lt.s32.totalorder %s98_s8, %s98_s8 }
   0x6   :  { %p105_p3 = por %p104_p2, %p103_p1 }
   0x8   :  { %p106_p4 = pnand %p105_p3, %p99_p0 }
   0xa   :  { %109 = shalt.err (!%p106_p4)
}
   0xb   :  { %s135_s9 = smov 128   ;;  %s136_s10 = smov 8  }
   0xc   :  { %19 = dma.hbm_to_vmem [thread:$0]  %s155_s0, 256, %s14_s7, [#allocation4], %s135_s9, %s135_s9, %s136_s10  }
   0xd   :  { %130 = dma.done.wait [#allocation4], 256  }
   0xe   :  { %131 = vsyncadd [#allocation4], 4294967040  ;;  %v137_v0 = vmov 0.0   ;;  %v31_v1 = vld [vmem:[#allocation3] sm:$0xf]  ;;  %vm44_vm0 = vcmask 1043456   ;;  %v55_v13 = vlaneseq }
   0xf   :  { %27 = vst [vmem:[#allocation2] sm:$0xf] %v137_v0  ;;  %28 = vst [vmem:[#allocation2 + $0x4] sm:$0xf] %v137_v0  ;;  %v35_v2 = vld [vmem:[#allocation3 + $0x4] sm:$0xf] }
  0x10   :  { %v32_v3 = vld [vmem:[#allocation3 + $0x8] sm:$0xf]  ;;  %v36_v6 = vld [vmem:[#allocation3 + $0xc] sm:$0xf]  ;;  %v56_v14 = vand.u32 127, %v55_v13  ;;  %v58_v15 = vshrl.u32 %v55_v13, 7 }
  0x11   :  { %s138_s0 = smov [#allocation6]   ;;  %vm65_vm1 = vcmask 1041409   ;;  %vm68_vm2 = vcmask 25600  }
  0x12   :  { %v59_v17 = vsub.s32 %v56_v14, %v58_v15  ;;  %s76_s13 = sshll.u32 %s138_s0, 4  ;;  %s77_s13 = int_to_ptr.vmem [resolvable:$true] %s76_s13 }
  0x13   :  { %s110_s14 = scalar_lea.vmem %s77_s13, 32  ;;  %p115_p6 = scmp.lt.s32.totalorder %s77_s13, %s77_s13 }
  0x14   :  { %p111_p5 = scmp.ne.s32.totalorder %s77_s13, %s110_s14  ;;  %p116_p7 = scmp.lt.s32.totalorder %s110_s14, %s110_s14 }
  0x16   :  { %v29_v4 = vld [vmem:[#allocation2] sm:$0xf]  ;;  %v30_v5 = vld [vmem:[#allocation2 + $0x4] sm:$0xf]  ;;  %p117_p8 = por %p116_p7, %p115_p6 }
  0x17   :  { %v33_v7 = vadd.f32 %v31_v1, %v29_v4  ;;  %v34_v8 = vadd.f32 %v32_v3, %v30_v5 }
  0x18   :  { %p118_p9 = pnand %p117_p8, %p111_p5 }
  0x19   :  { %v37_v9 = vadd.f32 %v35_v2, %v33_v7  ;;  %v38_v10 = vadd.f32 %v36_v6, %v34_v8 }
  0x1b   :  { %v45_v11 = vsel %vm44_vm0, %v37_v9, 0.0  ;;  %39 = vst [vmem:[#allocation2] sm:$0xf] %v37_v9  ;;  %40 = vst [vmem:[#allocation2 + $0x4] sm:$0xf] %v38_v10  ;;  %v48_v12 = vsel %vm44_vm0, %v38_v10, 0.0 }
  0x1c   :  { %46 = vadd.xlane.f32.xlu0 %v45_v11 }
  0x20   :  { %49 = vadd.xlane.f32.xlu0 %v48_v12 }
  0xa5   :  { %v47_v16 = vpop.xlane.xlu0 %46 }
  0xa6   :  { %v51_v18 = vmul.f32 0.00390625, %v47_v16 }
  0xa8   :  { %v60_v21 = vrot.slane %v51_v18, %v59_v17 }
  0xa9   :  { %v50_v19 = vpop.xlane.xlu0 %49 }
  0xaa   :  { %v52_v20 = vmul.f32 0.00390625, %v50_v19 }
  0xac   :  { %v64_v22 = vrot.slane %v52_v20, %v59_v17 }
  0xae   :  { %v66_v23 = vsel %vm65_vm1, %v64_v22, %v60_v21 }
  0xaf   :  { %69 = vst.msk [vmem:[#allocation6] sm:$0x3] %vm68_vm2, %v66_v23 }
  0xb0   :  { %121 = shalt.err (!%p118_p9)
}
  0xb1   :  { %79 = dma.vmem_to_hbm [thread:$0]  %s77_s13, 32, %s156_s1, [#allocation5]  }
  0xb2   :  { %132 = dma.done.wait [#allocation5], 32  }
  0xb3   :  { %133 = vsyncadd [#allocation5], 4294967264 }
  0xb4   :  { %83 = vsyncpa [#allocation4], 1 }
  0xb5   :  { %84 = vsyncpa [#allocation5], 1 }

</bundles_post_ra>
